<compile_context>
chip_gen: v6e
topology: v6e:2x2x1
jax: 0.10.0
libtpu: 0.0.40
codegen_flags: <defaults>
</compile_context>

<pallas_src>
import functools

import jax
import jax.numpy as jnp
from jax.experimental import pallas as pl
from jax.experimental.pallas import tpu as pltpu

EPS = 1e-5  # nn.LayerNorm default eps
_INV_SQRT2 = 0.7071067811865476
_VMEM_LIMIT = 48 * 1024 * 1024


# ----------------------------- in-kernel helpers -----------------------------

def _layernorm(x, gamma, beta):
    mu = jnp.mean(x, axis=-1, keepdims=True)
    var = jnp.mean((x - mu) ** 2, axis=-1, keepdims=True)
    return (x - mu) * jax.lax.rsqrt(var + EPS) * gamma + beta


def _erf(x):
    # Abramowitz & Stegun 7.1.26 rational approximation (|err| < 1.5e-7 before
    # the approx reciprocal; ~1e-3 after, well inside the test tolerance).
    # exp and the approx reciprocal land on the EUP slot (cheap on v5e).
    a1, a2, a3, a4, a5 = (0.254829592, -0.284496736, 1.421413741,
                          -1.453152027, 1.061405429)
    p = 0.3275911
    s = jnp.where(x >= 0.0, 1.0, -1.0)
    ax = jnp.abs(x)
    t = pl.reciprocal(1.0 + p * ax, approx=True)
    poly = ((((a5 * t + a4) * t + a3) * t + a2) * t + a1) * t
    return s * (1.0 - poly * jnp.exp(-ax * ax))


def _gelu_exact(x):
    # matches torch.nn.GELU() (erf-based) semantics; kept in f32
    return 0.5 * x * (1.0 + _erf(x * _INV_SQRT2))


def _pick_row_tile(m, cap=1024):
    # NOTE: falls back to the full dimension if no divisor in range exists.
    if m <= cap:
        return m
    for t in range(cap, 15, -16):
        if m % t == 0:
            return t
    return m


def _pick_q_tile(q, cap=256):
    # cap sized against v7x's 64 MiB VMEM including attention intermediates
    # (per-head (Qt, K) logits per view, kp/vp blocks, (Qt, 2*dim) GELU tmp).
    if q <= cap:
        return q
    for t in range(cap, 7, -8):
        if q % t == 0:
            return t
    return q


# -------------------- kernel 1: fused LN + Linear for K and V --------------------

def _kv_project_kernel(k_ref, v_ref, kg_ref, kb_ref, kw_ref, kbias_ref,
                       vg_ref, vb_ref, vw_ref, vbias_ref, ko_ref, vo_ref):
    bf16 = jnp.bfloat16
    f32 = jnp.float32
    k_ln = _layernorm(k_ref[...], kg_ref[...], kb_ref[...])
    ko_ref[...] = (jnp.dot(k_ln.astype(bf16), kw_ref[...],
                           preferred_element_type=f32)
                   + kbias_ref[...]).astype(bf16)
    v_ln = _layernorm(v_ref[...], vg_ref[...], vb_ref[...])
    vo_ref[...] = (jnp.dot(v_ln.astype(bf16), vw_ref[...],
                           preferred_element_type=f32)
                   + vbias_ref[...]).astype(bf16)


def kv_project(k_t, v_t, p):
    M, d = k_t.shape
    hd = p['k_w'].shape[1]
    tm = _pick_row_tile(M)
    bf16 = jnp.bfloat16

    row_spec = pl.BlockSpec((tm, d), lambda i: (i, 0))
    out_spec = pl.BlockSpec((tm, hd), lambda i: (i, 0))
    vec_d = pl.BlockSpec((1, d), lambda i: (0, 0))
    vec_hd = pl.BlockSpec((1, hd), lambda i: (0, 0))
    mat = pl.BlockSpec((d, hd), lambda i: (0, 0))

    return pl.pallas_call(
        _kv_project_kernel,
        out_shape=(jax.ShapeDtypeStruct((M, hd), bf16),
                   jax.ShapeDtypeStruct((M, hd), bf16)),
        grid=(M // tm,),
        in_specs=[row_spec, row_spec,
                  vec_d, vec_d, mat, vec_hd,
                  vec_d, vec_d, mat, vec_hd],
        out_specs=(out_spec, out_spec),
        compiler_params=pltpu.CompilerParams(
            dimension_semantics=("parallel",),
            vmem_limit_bytes=_VMEM_LIMIT),
    )(k_t, v_t,
      p['k_g'].reshape(1, d), p['k_b'].reshape(1, d),
      p['k_w'].astype(bf16), p['k_bias'].reshape(1, hd),
      p['v_g'].reshape(1, d), p['v_b'].reshape(1, d),
      p['v_w'].astype(bf16), p['v_bias'].reshape(1, hd))


# ------ kernel 2: to_q + attention + proj + skip + prenorm + MLP + postnorm ------

def _fused_attn_out_kernel(q_ref, kp_ref, vp_ref, skip_ref,
                           qg_ref, qb_ref, qw_ref, qbias_ref,
                           pw_ref, pb_ref, g1_ref, b1_ref,
                           w1_ref, bb1_ref, w2_ref, bb2_ref,
                           g2_ref, b2_ref,
                           o_ref, *, heads, dim_head, n_views, kv_len):
    bf16 = jnp.bfloat16
    f32 = jnp.float32

    # ---- to_q: LayerNorm + Linear (softmax scale pre-folded into qw/qbias) ----
    qg = qg_ref[...]
    qb = qb_ref[...]
    qw = qw_ref[...]
    qbias = qbias_ref[...]
    qp = []  # per-view projected (and scaled) queries, (Qt, heads*dim_head), bf16
    for i in range(n_views):
        q_ln = _layernorm(q_ref[0, i], qg, qb)
        qp.append((jnp.dot(q_ln.astype(bf16), qw, preferred_element_type=f32)
                   + qbias).astype(bf16))               # single f32->bf16 cast

    # ---- accumulator for proj output: starts at skip + proj bias (f32) ----
    z = skip_ref[0] + pb_ref[...]                        # (Qt, d)

    # ---- multi-head attention; softmax over the union of all views' keys ----
    # Each view's query attends to its own view's keys; the joint max /
    # summed numerator-denominator implement the softmax over n*K keys.
    # The per-head output is immediately projected (z += a_h @ P_h), keeping
    # every store lane-dense and avoiding any (Qt, heads*dim_head) scratch.
    for h in range(heads):
        lo = h * dim_head
        hi = lo + dim_head
        logits = []
        for i in range(n_views):
            q_h = qp[i][:, lo:hi]                                    # (Qt, dh) bf16
            k_h = kp_ref[0, i * kv_len:(i + 1) * kv_len, lo:hi]      # (K, dh) bf16
            logits.append(jnp.einsum('qd,kd->qk', q_h, k_h,
                                     preferred_element_type=f32))    # (Qt, K) f32
        m_h = functools.reduce(
            jnp.maximum,
            [jnp.max(l, axis=-1, keepdims=True) for l in logits])    # (Qt, 1)
        num = None
        den = None
        for i in range(n_views):
            p_i = jnp.exp(logits[i] - m_h)                           # (Qt, K) f32
            d_i = jnp.sum(p_i, axis=-1, keepdims=True)               # (Qt, 1)
            v_h = vp_ref[0, i * kv_len:(i + 1) * kv_len, lo:hi]      # (K, dh) bf16
            pv = jnp.dot(p_i.astype(bf16), v_h,
                         preferred_element_type=f32)                 # (Qt, dh)
            num = pv if num is None else num + pv
            den = d_i if den is None else den + d_i
        att_h = num * pl.reciprocal(den, approx=True)                # (Qt, dh) f32
        # proj folded into the head loop: lane-dense (Qt, d) accumulation
        z = z + jnp.dot(att_h.astype(bf16), pw_ref[h],
                        preferred_element_type=f32)                  # (Qt, d)

    # ---- prenorm + MLP(GELU) + residual + postnorm ----
    z = _layernorm(z, g1_ref[...], b1_ref[...])
    hmid = (jnp.dot(z.astype(bf16), w1_ref[...], preferred_element_type=f32)
            + bb1_ref[...])
    hmid = _gelu_exact(hmid)
    z = z + (jnp.dot(hmid.astype(bf16), w2_ref[...], preferred_element_type=f32)
             + bb2_ref[...])
    o_ref[0] = _layernorm(z, g2_ref[...], b2_ref[...])


def fused_attn_out(q_t, kp, vp, skip_t, p, heads, dim_head, scale, n_views, kv_len):
    b, n, Q, d = q_t.shape
    nK = kp.shape[1]
    hd = heads * dim_head
    d2 = p['mlp_w1'].shape[1]
    Qt = _pick_q_tile(Q)
    bf16 = jnp.bfloat16

    def const(r, c):
        return pl.BlockSpec((r, c), lambda bi, qi: (0, 0))

    kern = functools.partial(_fused_attn_out_kernel, heads=heads,
                             dim_head=dim_head, n_views=n_views, kv_len=kv_len)

    return pl.pallas_call(
        kern,
        out_shape=jax.ShapeDtypeStruct((b, Q, d), jnp.float32),
        grid=(b, Q // Qt),
        in_specs=[
            pl.BlockSpec((1, n, Qt, d), lambda bi, qi: (bi, 0, qi, 0)),   # q
            pl.BlockSpec((1, nK, hd), lambda bi, qi: (bi, 0, 0)),         # kp
            pl.BlockSpec((1, nK, hd), lambda bi, qi: (bi, 0, 0)),         # vp
            pl.BlockSpec((1, Qt, d), lambda bi, qi: (bi, qi, 0)),         # skip
            const(1, d), const(1, d),            # to_q LayerNorm gamma / beta
            const(d, hd), const(1, hd),          # q_w (scaled, bf16), q_bias
            pl.BlockSpec((heads, dim_head, d), lambda bi, qi: (0, 0, 0)),  # proj_w
            const(1, d),                         # proj_b
            const(1, d), const(1, d),            # prenorm
            const(d, d2), const(1, d2),          # mlp w1 / b1
            const(d2, d), const(1, d),           # mlp w2 / b2
            const(1, d), const(1, d),            # postnorm
        ],
        out_specs=pl.BlockSpec((1, Qt, d), lambda bi, qi: (bi, qi, 0)),
        compiler_params=pltpu.CompilerParams(
            dimension_semantics=("parallel", "parallel"),
            vmem_limit_bytes=_VMEM_LIMIT),
    )(q_t, kp, vp, skip_t,
      p['q_g'].reshape(1, d), p['q_b'].reshape(1, d),
      (p['q_w'] * scale).astype(bf16), (p['q_bias'] * scale).reshape(1, hd),
      p['proj_w'].reshape(heads, dim_head, d).astype(bf16),
      p['proj_b'].reshape(1, d),
      p['pre_g'].reshape(1, d), p['pre_b'].reshape(1, d),
      p['mlp_w1'].astype(bf16), p['mlp_b1'].reshape(1, d2),
      p['mlp_w2'].astype(bf16), p['mlp_b2'].reshape(1, d),
      p['post_g'].reshape(1, d), p['post_b'].reshape(1, d))


# ----------------------------- full module forward -----------------------------

def cross_attention(q, k, v, skip, p, heads, dim_head):
    b, n, d, H, W = q.shape
    h, w = k.shape[3], k.shape[4]
    Q, K = H * W, h * w
    hd = heads * dim_head
    scale = float(dim_head) ** -0.5

    # channel-last token layouts (pure transposes/reshapes; the only XLA glue)
    q_t = jnp.transpose(q, (0, 1, 3, 4, 2)).reshape(b, n, Q, d)
    k_t = jnp.transpose(k, (0, 1, 3, 4, 2)).reshape(b * n * K, d)
    v_t = jnp.transpose(v, (0, 1, 3, 4, 2)).reshape(b * n * K, d)
    skip_t = jnp.transpose(skip, (0, 2, 3, 1)).reshape(b, Q, d)

    # kernel 1: to_k / to_v (LayerNorm + Linear), bf16 outputs
    kp, vp = kv_project(k_t, v_t, p)
    kp = kp.reshape(b, n * K, hd)     # views stacked along the key axis
    vp = vp.reshape(b, n * K, hd)

    # kernel 2: to_q + attention + proj + skip + prenorm + MLP + postnorm
    z = fused_attn_out(q_t, kp, vp, skip_t, p, heads, dim_head, scale, n, K)

    # 'b (H W) d -> b d H W'
    return jnp.transpose(z.reshape(b, H, W, d), (0, 3, 1, 2))


# ----------------------------- params + reference -----------------------------

def init_params(key, dim, heads, dim_head):
    hd = heads * dim_head
    ks = jax.random.split(key, 22)
    r = lambda kk, shape, s=0.1: (s * jax.random.normal(kk, shape)).astype(jnp.float32)
    return {
        'q_g': 1.0 + r(ks[0], (dim,), 0.05), 'q_b': r(ks[1], (dim,), 0.05),
        'q_w': r(ks[2], (dim, hd)), 'q_bias': r(ks[3], (hd,), 0.05),
        'k_g': 1.0 + r(ks[4], (dim,), 0.05), 'k_b': r(ks[5], (dim,), 0.05),
        'k_w': r(ks[6], (dim, hd)), 'k_bias': r(ks[7], (hd,), 0.05),
        'v_g': 1.0 + r(ks[8], (dim,), 0.05), 'v_b': r(ks[9], (dim,), 0.05),
        'v_w': r(ks[10], (dim, hd)), 'v_bias': r(ks[11], (hd,), 0.05),
        'proj_w': r(ks[12], (hd, dim)), 'proj_b': r(ks[13], (dim,), 0.05),
        'pre_g': 1.0 + r(ks[14], (dim,), 0.05), 'pre_b': r(ks[15], (dim,), 0.05),
        'mlp_w1': r(ks[16], (dim, 2 * dim)), 'mlp_b1': r(ks[17], (2 * dim,), 0.05),
        'mlp_w2': r(ks[18], (2 * dim, dim)), 'mlp_b2': r(ks[19], (dim,), 0.05),
        'post_g': 1.0 + r(ks[20], (dim,), 0.05), 'post_b': r(ks[21], (dim,), 0.05),
    }


def reference(q, k, v, skip, p, heads, dim_head):
    b, n, d, H, W = q.shape
    h, w = k.shape[3], k.shape[4]
    Q, K = H * W, h * w
    m, dh = heads, dim_head
    scale = float(dim_head) ** -0.5

    def ln(x, g, be):
        mu = x.mean(-1, keepdims=True)
        var = ((x - mu) ** 2).mean(-1, keepdims=True)
        return (x - mu) / jnp.sqrt(var + EPS) * g + be

    q_t = jnp.transpose(q, (0, 1, 3, 4, 2)).reshape(b, n, Q, d)
    k_t = jnp.transpose(k, (0, 1, 3, 4, 2)).reshape(b, n, K, d)
    v_t = jnp.transpose(v, (0, 1, 3, 4, 2)).reshape(b, n * K, d)

    qp = ln(q_t, p['q_g'], p['q_b']) @ p['q_w'] + p['q_bias']
    kp = ln(k_t, p['k_g'], p['k_b']) @ p['k_w'] + p['k_bias']
    vp = ln(v_t, p['v_g'], p['v_b']) @ p['v_w'] + p['v_bias']

    qh = jnp.transpose(qp.reshape(b, n, Q, m, dh), (0, 3, 1, 2, 4)).reshape(b * m, n, Q, dh)
    kh = jnp.transpose(kp.reshape(b, n, K, m, dh), (0, 3, 1, 2, 4)).reshape(b * m, n, K, dh)
    vh = jnp.transpose(vp.reshape(b, n * K, m, dh), (0, 2, 1, 3)).reshape(b * m, n * K, dh)

    dot = scale * jnp.einsum('bnqd,bnkd->bnqk', qh, kh)
    dot = jnp.transpose(dot, (0, 2, 1, 3)).reshape(b * m, Q, n * K)
    att = jax.nn.softmax(dot, axis=-1)
    a = jnp.einsum('bqk,bkd->bqd', att, vh)
    a = jnp.transpose(a.reshape(b, m, Q, dh), (0, 2, 1, 3)).reshape(b, Q, m * dh)

    z = a @ p['proj_w'] + p['proj_b']
    z = z + jnp.transpose(skip, (0, 2, 3, 1)).reshape(b, Q, d)
    z = ln(z, p['pre_g'], p['pre_b'])
    hh = jax.nn.gelu(z @ p['mlp_w1'] + p['mlp_b1'], approximate=False)
    z = z + hh @ p['mlp_w2'] + p['mlp_b2']
    z = ln(z, p['post_g'], p['post_b'])
    return jnp.transpose(z.reshape(b, H, W, d), (0, 3, 1, 2))


# ----------------------------- main -----------------------------

if __name__ == "__main__":
    b, n, dim = 2, 2, 32
    H, W = 4, 4
    h, w = 4, 4
    heads, dim_head = 4, 8

    key = jax.random.PRNGKey(0)
    kq, kk, kv, ksk, kp = jax.random.split(key, 5)
    q = jax.random.normal(kq, (b, n, dim, H, W), jnp.float32)
    k = jax.random.normal(kk, (b, n, dim, h, w), jnp.float32)
    v = jax.random.normal(kv, (b, n, dim, h, w), jnp.float32)
    skip = jax.random.normal(ksk, (b, dim, H, W), jnp.float32)
    params = init_params(kp, dim, heads, dim_head)

    out = cross_attention(q, k, v, skip, params, heads, dim_head)
    out = jax.block_until_ready(out)

    ref = reference(q, k, v, skip, params, heads, dim_head)
    assert out.shape == (b, dim, H, W), out.shape
    max_err = float(jnp.max(jnp.abs(out - ref)))
    # bf16 MXU operands + approx reciprocals => relaxed (but still tight) tolerance
    assert jnp.allclose(out, ref, atol=2e-2, rtol=2e-2), max_err

    print("KERNEL_OK")
</pallas_src>

<mosaic_0001>
module attributes {stable_mosaic.version = 11 : i64} {
  func.func @_kv_project_kernel(%arg0: i32, %arg1: memref<64x32xf32, #tpu.memory_space<vmem>>, %arg2: memref<64x32xf32, #tpu.memory_space<vmem>>, %arg3: memref<1x32xf32, #tpu.memory_space<vmem>>, %arg4: memref<1x32xf32, #tpu.memory_space<vmem>>, %arg5: memref<32x32xbf16, #tpu.memory_space<vmem>>, %arg6: memref<1x32xf32, #tpu.memory_space<vmem>>, %arg7: memref<1x32xf32, #tpu.memory_space<vmem>>, %arg8: memref<1x32xf32, #tpu.memory_space<vmem>>, %arg9: memref<32x32xbf16, #tpu.memory_space<vmem>>, %arg10: memref<1x32xf32, #tpu.memory_space<vmem>>, %arg11: memref<64x32xbf16, #tpu.memory_space<vmem>>, %arg12: memref<64x32xbf16, #tpu.memory_space<vmem>>) attributes {dimension_semantics = [#tpu.dimension_semantics<parallel>], iteration_bounds = array<i64: 1>, scalar_prefetch = 0 : i64, scratch_operands = 0 : i64, tpu.core_type = #tpu.core_type<tc>, window_params = [{transform_indices = @transform_0, window_bounds = array<i64: 64, 32>}, {transform_indices = @transform_1, window_bounds = array<i64: 64, 32>}, {pipeline_mode = #tpu.pipeline_mode<synchronous>, transform_indices = @transform_2, window_bounds = array<i64: 1, 32>}, {pipeline_mode = #tpu.pipeline_mode<synchronous>, transform_indices = @transform_3, window_bounds = array<i64: 1, 32>}, {pipeline_mode = #tpu.pipeline_mode<synchronous>, transform_indices = @transform_4, window_bounds = array<i64: 32, 32>}, {pipeline_mode = #tpu.pipeline_mode<synchronous>, transform_indices = @transform_5, window_bounds = array<i64: 1, 32>}, {pipeline_mode = #tpu.pipeline_mode<synchronous>, transform_indices = @transform_6, window_bounds = array<i64: 1, 32>}, {pipeline_mode = #tpu.pipeline_mode<synchronous>, transform_indices = @transform_7, window_bounds = array<i64: 1, 32>}, {pipeline_mode = #tpu.pipeline_mode<synchronous>, transform_indices = @transform_8, window_bounds = array<i64: 32, 32>}, {pipeline_mode = #tpu.pipeline_mode<synchronous>, transform_indices = @transform_9, window_bounds = array<i64: 1, 32>}, {transform_indices = @transform_10, window_bounds = array<i64: 64, 32>}, {transform_indices = @transform_11, window_bounds = array<i64: 64, 32>}]} {
    %c0 = arith.constant 0 : index
    %c0_0 = arith.constant 0 : index
    %0 = vector.load %arg1[%c0, %c0_0] : memref<64x32xf32, #tpu.memory_space<vmem>>, vector<64x32xf32>
    %c0_1 = arith.constant 0 : index
    %c0_2 = arith.constant 0 : index
    %1 = vector.load %arg3[%c0_1, %c0_2] : memref<1x32xf32, #tpu.memory_space<vmem>>, vector<1x32xf32>
    %c0_3 = arith.constant 0 : index
    %c0_4 = arith.constant 0 : index
    %2 = vector.load %arg4[%c0_3, %c0_4] : memref<1x32xf32, #tpu.memory_space<vmem>>, vector<1x32xf32>
    %cst = arith.constant dense<0.000000e+00> : vector<64xf32>
    %3 = vector.multi_reduction <add>, %0, %cst [1] : vector<64x32xf32> to vector<64xf32>
    %4 = vector.shape_cast %3 : vector<64xf32> to vector<64x1xf32>
    %cst_5 = arith.constant 3.200000e+01 : f32
    %5 = vector.broadcast %cst_5 : f32 to vector<64x1xf32>
    %6 = arith.divf %4, %5 : vector<64x1xf32>
    %7 = vector.broadcast %6 : vector<64x1xf32> to vector<64x32xf32>
    %8 = arith.subf %0, %7 : vector<64x32xf32>
    %9 = arith.mulf %8, %8 : vector<64x32xf32>
    %cst_6 = arith.constant dense<0.000000e+00> : vector<64xf32>
    %10 = vector.multi_reduction <add>, %9, %cst_6 [1] : vector<64x32xf32> to vector<64xf32>
    %11 = vector.shape_cast %10 : vector<64xf32> to vector<64x1xf32>
    %cst_7 = arith.constant 3.200000e+01 : f32
    %12 = vector.broadcast %cst_7 : f32 to vector<64x1xf32>
    %13 = arith.divf %11, %12 : vector<64x1xf32>
    %14 = vector.broadcast %6 : vector<64x1xf32> to vector<64x32xf32>
    %15 = arith.subf %0, %14 : vector<64x32xf32>
    %cst_8 = arith.constant 9.99999974E-6 : f32
    %16 = vector.broadcast %cst_8 : f32 to vector<64x1xf32>
    %17 = arith.addf %13, %16 : vector<64x1xf32>
    %18 = math.rsqrt %17 : vector<64x1xf32>
    %19 = vector.broadcast %18 : vector<64x1xf32> to vector<64x32xf32>
    %20 = arith.mulf %15, %19 : vector<64x32xf32>
    %21 = vector.broadcast %1 : vector<1x32xf32> to vector<64x32xf32>
    %22 = arith.mulf %20, %21 : vector<64x32xf32>
    %23 = vector.broadcast %2 : vector<1x32xf32> to vector<64x32xf32>
    %24 = arith.addf %22, %23 : vector<64x32xf32>
    %25 = arith.truncf %24 : vector<64x32xf32> to vector<64x32xbf16>
    %c0_9 = arith.constant 0 : index
    %c0_10 = arith.constant 0 : index
    %26 = vector.load %arg5[%c0_9, %c0_10] : memref<32x32xbf16, #tpu.memory_space<vmem>>, vector<32x32xbf16>
    %cst_11 = arith.constant dense<0.000000e+00> : vector<64x32xf32>
    %27 = tpu.matmul %25, %26, %cst_11 {dimension_numbers = #tpu.dot_dimension_numbers<[1], [0], [0], [1], [0, 0, 1, 1], [], []>} : vector<64x32xbf16>, vector<32x32xbf16>, vector<64x32xf32> -> vector<64x32xf32>
    %c0_12 = arith.constant 0 : index
    %c0_13 = arith.constant 0 : index
    %28 = vector.load %arg6[%c0_12, %c0_13] : memref<1x32xf32, #tpu.memory_space<vmem>>, vector<1x32xf32>
    %29 = vector.broadcast %28 : vector<1x32xf32> to vector<64x32xf32>
    %30 = arith.addf %27, %29 : vector<64x32xf32>
    %31 = arith.truncf %30 : vector<64x32xf32> to vector<64x32xbf16>
    %c0_14 = arith.constant 0 : index
    %c0_15 = arith.constant 0 : index
    %32 = vector.load %arg11[%c0_14, %c0_15] : memref<64x32xbf16, #tpu.memory_space<vmem>>, vector<64x32xbf16>
    tpu.vector_store %arg11[%c0_14, %c0_15], %31 {strides = array<i32>} : memref<64x32xbf16, #tpu.memory_space<vmem>>, vector<64x32xbf16>,
    %c0_16 = arith.constant 0 : index
    %c0_17 = arith.constant 0 : index
    %33 = vector.load %arg2[%c0_16, %c0_17] : memref<64x32xf32, #tpu.memory_space<vmem>>, vector<64x32xf32>
    %c0_18 = arith.constant 0 : index
    %c0_19 = arith.constant 0 : index
    %34 = vector.load %arg7[%c0_18, %c0_19] : memref<1x32xf32, #tpu.memory_space<vmem>>, vector<1x32xf32>
    %c0_20 = arith.constant 0 : index
    %c0_21 = arith.constant 0 : index
    %35 = vector.load %arg8[%c0_20, %c0_21] : memref<1x32xf32, #tpu.memory_space<vmem>>, vector<1x32xf32>
    %cst_22 = arith.constant dense<0.000000e+00> : vector<64xf32>
    %36 = vector.multi_reduction <add>, %33, %cst_22 [1] : vector<64x32xf32> to vector<64xf32>
    %37 = vector.shape_cast %36 : vector<64xf32> to vector<64x1xf32>
    %cst_23 = arith.constant 3.200000e+01 : f32
    %38 = vector.broadcast %cst_23 : f32 to vector<64x1xf32>
    %39 = arith.divf %37, %38 : vector<64x1xf32>
    %40 = vector.broadcast %39 : vector<64x1xf32> to vector<64x32xf32>
    %41 = arith.subf %33, %40 : vector<64x32xf32>
    %42 = arith.mulf %41, %41 : vector<64x32xf32>
    %cst_24 = arith.constant dense<0.000000e+00> : vector<64xf32>
    %43 = vector.multi_reduction <add>, %42, %cst_24 [1] : vector<64x32xf32> to vector<64xf32>
    %44 = vector.shape_cast %43 : vector<64xf32> to vector<64x1xf32>
    %cst_25 = arith.constant 3.200000e+01 : f32
    %45 = vector.broadcast %cst_25 : f32 to vector<64x1xf32>
    %46 = arith.divf %44, %45 : vector<64x1xf32>
    %47 = vector.broadcast %39 : vector<64x1xf32> to vector<64x32xf32>
    %48 = arith.subf %33, %47 : vector<64x32xf32>
    %cst_26 = arith.constant 9.99999974E-6 : f32
    %49 = vector.broadcast %cst_26 : f32 to vector<64x1xf32>
    %50 = arith.addf %46, %49 : vector<64x1xf32>
    %51 = math.rsqrt %50 : vector<64x1xf32>
    %52 = vector.broadcast %51 : vector<64x1xf32> to vector<64x32xf32>
    %53 = arith.mulf %48, %52 : vector<64x32xf32>
    %54 = vector.broadcast %34 : vector<1x32xf32> to vector<64x32xf32>
    %55 = arith.mulf %53, %54 : vector<64x32xf32>
    %56 = vector.broadcast %35 : vector<1x32xf32> to vector<64x32xf32>
    %57 = arith.addf %55, %56 : vector<64x32xf32>
    %58 = arith.truncf %57 : vector<64x32xf32> to vector<64x32xbf16>
    %c0_27 = arith.constant 0 : index
    %c0_28 = arith.constant 0 : index
    %59 = vector.load %arg9[%c0_27, %c0_28] : memref<32x32xbf16, #tpu.memory_space<vmem>>, vector<32x32xbf16>
    %cst_29 = arith.constant dense<0.000000e+00> : vector<64x32xf32>
    %60 = tpu.matmul %58, %59, %cst_29 {dimension_numbers = #tpu.dot_dimension_numbers<[1], [0], [0], [1], [0, 0, 1, 1], [], []>} : vector<64x32xbf16>, vector<32x32xbf16>, vector<64x32xf32> -> vector<64x32xf32>
    %c0_30 = arith.constant 0 : index
    %c0_31 = arith.constant 0 : index
    %61 = vector.load %arg10[%c0_30, %c0_31] : memref<1x32xf32, #tpu.memory_space<vmem>>, vector<1x32xf32>
    %62 = vector.broadcast %61 : vector<1x32xf32> to vector<64x32xf32>
    %63 = arith.addf %60, %62 : vector<64x32xf32>
    %64 = arith.truncf %63 : vector<64x32xf32> to vector<64x32xbf16>
    %c0_32 = arith.constant 0 : index
    %c0_33 = arith.constant 0 : index
    %65 = vector.load %arg12[%c0_32, %c0_33] : memref<64x32xbf16, #tpu.memory_space<vmem>>, vector<64x32xbf16>
    tpu.vector_store %arg12[%c0_32, %c0_33], %64 {strides = array<i32>} : memref<64x32xbf16, #tpu.memory_space<vmem>>, vector<64x32xbf16>,
    return
  }
  func.func @transform_0(%arg0: i32) -> (i32, i32) {
    %c0_i32 = arith.constant 0 : i32
    %c0_i32_0 = arith.constant 0 : i32
    return %arg0, %c0_i32 : i32, i32
  }
  func.func @transform_1(%arg0: i32) -> (i32, i32) {
    %c0_i32 = arith.constant 0 : i32
    %c0_i32_0 = arith.constant 0 : i32
    return %arg0, %c0_i32 : i32, i32
  }
  func.func @transform_2(%arg0: i32) -> (i32, i32) {
    %c0_i32 = arith.constant 0 : i32
    %c0_i32_0 = arith.constant 0 : i32
    %c0_i32_1 = arith.constant 0 : i32
    return %c0_i32, %c0_i32_0 : i32, i32
  }
  func.func @transform_3(%arg0: i32) -> (i32, i32) {
    %c0_i32 = arith.constant 0 : i32
    %c0_i32_0 = arith.constant 0 : i32
    %c0_i32_1 = arith.constant 0 : i32
    return %c0_i32, %c0_i32_0 : i32, i32
  }
  func.func @transform_4(%arg0: i32) -> (i32, i32) {
    %c0_i32 = arith.constant 0 : i32
    %c0_i32_0 = arith.constant 0 : i32
    %c0_i32_1 = arith.constant 0 : i32
    return %c0_i32, %c0_i32_0 : i32, i32
  }
  func.func @transform_5(%arg0: i32) -> (i32, i32) {
    %c0_i32 = arith.constant 0 : i32
    %c0_i32_0 = arith.constant 0 : i32
    %c0_i32_1 = arith.constant 0 : i32
    return %c0_i32, %c0_i32_0 : i32, i32
  }
  func.func @transform_6(%arg0: i32) -> (i32, i32) {
    %c0_i32 = arith.constant 0 : i32
    %c0_i32_0 = arith.constant 0 : i32
    %c0_i32_1 = arith.constant 0 : i32
    return %c0_i32, %c0_i32_0 : i32, i32
  }
  func.func @transform_7(%arg0: i32) -> (i32, i32) {
    %c0_i32 = arith.constant 0 : i32
    %c0_i32_0 = arith.constant 0 : i32
    %c0_i32_1 = arith.constant 0 : i32
    return %c0_i32, %c0_i32_0 : i32, i32
  }
  func.func @transform_8(%arg0: i32) -> (i32, i32) {
    %c0_i32 = arith.constant 0 : i32
    %c0_i32_0 = arith.constant 0 : i32
    %c0_i32_1 = arith.constant 0 : i32
    return %c0_i32, %c0_i32_0 : i32, i32
  }
  func.func @transform_9(%arg0: i32) -> (i32, i32) {
    %c0_i32 = arith.constant 0 : i32
    %c0_i32_0 = arith.constant 0 : i32
    %c0_i32_1 = arith.constant 0 : i32
    return %c0_i32, %c0_i32_0 : i32, i32
  }
  func.func @transform_10(%arg0: i32) -> (i32, i32) {
    %c0_i32 = arith.constant 0 : i32
    %c0_i32_0 = arith.constant 0 : i32
    return %arg0, %c0_i32 : i32, i32
  }
  func.func @transform_11(%arg0: i32) -> (i32, i32) {
    %c0_i32 = arith.constant 0 : i32
    %c0_i32_0 = arith.constant 0 : i32
    return %arg0, %c0_i32 : i32, i32
  }
}

</mosaic_0001>

<bundles_post_ra>
// kernel: tpu_custom_call.1
= control target key start
LH: loop header
LB: loop body
LE: loop exit
PB: predicated region body
PF: predicated region fallthrough
CT: control target
= control target key end

     0   :  { %vm48_vm0 = vcmask 261120   ;;  %vm318_vm1 = vcmask 257024   ;;  %s1145_s0 = inlined_call_operand.vmem [shape: f32[64,32], index: 0, kind: input, shape index: {}]   ;;  %s1146_s1 = inlined_call_operand.vmem [shape: f32[64,32], index: 1, kind: input, shape index: {}]   ;;  %s1147_s4 = inlined_call_operand.vmem [shape: bf16[32,32], index: 4, kind: input, shape index: {}]   ;;  %s1148_s8 = inlined_call_operand.vmem [shape: bf16[32,32], index: 8, kind: input, shape index: {}]   ;;  %s1149_s2 = inlined_call_operand.vmem [shape: f32[1,32], index: 2, kind: input, shape index: {}]   ;;  %s1150_s3 = inlined_call_operand.vmem [shape: f32[1,32], index: 3, kind: input, shape index: {}]   ;;  %s1151_s6 = inlined_call_operand.vmem [shape: f32[1,32], index: 6, kind: input, shape index: {}]   ;;  %s1152_s7 = inlined_call_operand.vmem [shape: f32[1,32], index: 7, kind: input, shape index: {}]   ;;  %s1153_s5 = inlined_call_operand.vmem [shape: f32[1,32], index: 5, kind: input, shape index: {}]   ;;  %s1154_s9 = inlined_call_operand.vmem [shape: f32[1,32], index: 9, kind: input, shape index: {}]   ;;  %s1155_s10 = inlined_call_operand.vmem [shape: bf16[64,32], index: 10, kind: output, shape index: {0}]   ;;  %s1156_s11 = inlined_call_operand.vmem [shape: bf16[64,32], index: 11, kind: output, shape index: {1}]  }
   0x1   :  { %v38_v0 = vld [vmem:[%s1145_s0] sm:$0xff]  ;;  %v39_v2 = vld [vmem:[%s1145_s0 + $0x8] sm:$0xff]  ;;  %v40_v8 = vld [vmem:[%s1145_s0 + $0x10] sm:$0xff] }
   0x2   :  { %v327_v1 = vld [vmem:[%s1146_s1] sm:$0xff]  ;;  %v49_v3 = vsel %vm48_vm0, %v38_v0, 0.0  ;;  %v328_v5 = vld [vmem:[%s1146_s1 + $0x8] sm:$0xff]  ;;  %v52_v6 = vsel %vm48_vm0, %v39_v2, 0.0  ;;  %v41_v9 = vld [vmem:[%s1145_s0 + $0x18] sm:$0xff]  ;;  %v55_v10 = vsel %vm48_vm0, %v40_v8, 0.0 }
   0x3   :  { %v337_v4 = vsel %vm48_vm0, %v327_v1, 0.0  ;;  %50 = vadd.xlane.f32.xlu0 %v49_v3  ;;  %v340_v7 = vsel %vm48_vm0, %v328_v5, 0.0  ;;  %v58_v11 = vsel %vm48_vm0, %v41_v9, 0.0  ;;  %v830_v12 = vld [vmem:[%s1146_s1 + $0x10] sm:$0xff]  ;;  %v835_v13 = vld [vmem:[%s1146_s1 + $0x18] sm:$0xff]  ;;  %v844_v16 = vld [vmem:[%s1145_s0 + $0x20] sm:$0xff] }
   0x4   :  { %338 = vadd.xlane.f32.xlu1 %v337_v4  ;;  %v343_v14 = vsel %vm48_vm0, %v830_v12, 0.0  ;;  %v346_v15 = vsel %vm48_vm0, %v835_v13, 0.0  ;;  %v849_v17 = vld [vmem:[%s1145_s0 + $0x28] sm:$0xff]  ;;  %v61_v18 = vsel %vm48_vm0, %v844_v16, 0.0  ;;  %v858_v20 = vld [vmem:[%s1146_s1 + $0x20] sm:$0xff]  ;;  %v872_v24 = vld [vmem:[%s1145_s0 + $0x30] sm:$0xff] }
   0x5   :  { %v64_v19 = vsel %vm48_vm0, %v849_v17, 0.0  ;;  %v863_v21 = vld [vmem:[%s1146_s1 + $0x28] sm:$0xff]  ;;  %v349_v22 = vsel %vm48_vm0, %v858_v20, 0.0  ;;  %v877_v25 = vld [vmem:[%s1145_s0 + $0x38] sm:$0xff]  ;;  %v67_v26 = vsel %vm48_vm0, %v872_v24, 0.0  ;;  %v886_v28 = vld [vmem:[%s1146_s1 + $0x30] sm:$0xff] }
   0x6   :  { %v352_v23 = vsel %vm48_vm0, %v863_v21, 0.0  ;;  %v70_v27 = vsel %vm48_vm0, %v877_v25, 0.0  ;;  %v891_v29 = vld [vmem:[%s1146_s1 + $0x38] sm:$0xff]  ;;  %v355_v30 = vsel %vm48_vm0, %v886_v28, 0.0 }
   0x7   :  { %53 = vadd.xlane.f32.xlu0 %v52_v6  ;;  %v358_v31 = vsel %vm48_vm0, %v891_v29, 0.0 }
   0x8   :  { %341 = vadd.xlane.f32.xlu1 %v340_v7 }
   0xb   :  { %56 = vadd.xlane.f32.xlu0 %v55_v10 }
   0xc   :  { %59 = vadd.xlane.f32.xlu1 %v58_v11 }
   0xf   :  { %344 = vadd.xlane.f32.xlu0 %v343_v14 }
  0x10   :  { %347 = vadd.xlane.f32.xlu1 %v346_v15 }
  0x13   :  { %62 = vadd.xlane.f32.xlu0 %v61_v18 }
  0x14   :  { %65 = vadd.xlane.f32.xlu1 %v64_v19 }
  0x17   :  { %350 = vadd.xlane.f32.xlu0 %v349_v22 }
  0x18   :  { %353 = vadd.xlane.f32.xlu1 %v352_v23 }
  0x1b   :  { %68 = vadd.xlane.f32.xlu0 %v67_v26 }
  0x1c   :  { %71 = vadd.xlane.f32.xlu1 %v70_v27 }
  0x1f   :  { %356 = vadd.xlane.f32.xlu0 %v355_v30 }
  0x20   :  { %359 = vadd.xlane.f32.xlu1 %v358_v31 }
  0x8c   :  { %v51_v32 = vpop.xlane.xlu0 %50 }
  0x8d   :  { %v339_v33 = vpop.xlane.xlu1 %338  ;;  %v74_v34 = vmul.f32 0.03125, %v51_v32 }
  0x8e   :  { %v361_v35 = vmul.f32 0.03125, %v339_v33 }
  0x8f   :  { %v897_v36 = vsub.f32 %v38_v0, %v74_v34 }
  0x90   :  { %v899_v37 = vsub.f32 %v327_v1, %v361_v35  ;;  %v54_v38 = vpop.xlane.xlu0 %53 }
  0x91   :  { %v342_v39 = vpop.xlane.xlu1 %341  ;;  %v75_v40 = vmul.f32 0.03125, %v54_v38  ;;  %v90_v42 = vmul.f32 %v897_v36, %v897_v36 }
  0x92   :  { %v362_v41 = vmul.f32 0.03125, %v342_v39  ;;  %v377_v43 = vmul.f32 %v899_v37, %v899_v37 }
  0x93   :  { %v905_v44 = vsub.f32 %v39_v2, %v75_v40  ;;  %v98_v46 = vsel %vm48_vm0, %v90_v42, 0.0 }
  0x94   :  { %v907_v45 = vsub.f32 %v328_v5, %v362_v41  ;;  %99 = vadd.xlane.f32.xlu0 %v98_v46  ;;  %v57_v47 = vpop.xlane.xlu0 %56  ;;  %v385_v49 = vsel %vm48_vm0, %v377_v43, 0.0 }
  0x95   :  { %v60_v48 = vpop.xlane.xlu1 %59  ;;  %v76_v50 = vmul.f32 0.03125, %v57_v47  ;;  %v91_v52 = vmul.f32 %v905_v44, %v905_v44 }
  0x96   :  { %v77_v51 = vmul.f32 0.03125, %v60_v48  ;;  %v378_v53 = vmul.f32 %v907_v45, %v907_v45 }
  0x97   :  { %v915_v54 = vsub.f32 %v40_v8, %v76_v50  ;;  %v101_v56 = vsel %vm48_vm0, %v91_v52, 0.0 }
  0x98   :  { %v917_v55 = vsub.f32 %v41_v9, %v77_v51  ;;  %386 = vadd.xlane.f32.xlu0 %v385_v49  ;;  %102 = vadd.xlane.f32.xlu1 %v101_v56  ;;  %v345_v57 = vpop.xlane.xlu0 %344  ;;  %v388_v59 = vsel %vm48_vm0, %v378_v53, 0.0  ;;  %v708_v53 = vld [vmem:[%s1147_s4] sm:$0xff]   ;;  %v709_v56 = vld [vmem:[%s1148_s8 + $0x8] sm:$0xff]  }
  0x99   :  { %v348_v58 = vpop.xlane.xlu1 %347  ;;  %v363_v60 = vmul.f32 0.03125, %v345_v57  ;;  %v92_v62 = vmul.f32 %v915_v54, %v915_v54  ;;  %695 = vmatprep.subr.bf16.mxu1 %v709_v56  ;;  %v710_v57 = vld [vmem:[%s1148_s8] sm:$0xff]  }
  0x9a   :  { %v364_v61 = vmul.f32 0.03125, %v348_v58  ;;  %v93_v63 = vmul.f32 %v917_v55, %v917_v55  ;;  %696 = vmatpush3.bf16.msra.mxu1 %v709_v56  ;;  %v1017_v56 = vld [vmem:[%s1151_s6] ss:$0 sm:$0xff] }
  0x9b   :  { %v926_v0 = vsub.f32 %v830_v12, %v363_v60  ;;  %v104_v2 = vsel %vm48_vm0, %v92_v62, 0.0  ;;  %697 = vmatprep.subr.bf16.mxu1 %v710_v57 }
  0x9c   :  { %v929_v1 = vsub.f32 %v835_v13, %v364_v61  ;;  %389 = vadd.xlane.f32.xlu1 %v388_v59  ;;  %105 = vadd.xlane.f32.xlu0 %v104_v2  ;;  %v63_v3 = vpop.xlane.xlu0 %62  ;;  %v107_v5 = vsel %vm48_vm0, %v93_v63, 0.0 }
  0x9d   :  { %v66_v4 = vpop.xlane.xlu1 %65  ;;  %v78_v6 = vmul.f32 0.03125, %v63_v3  ;;  %v379_v8 = vmul.f32 %v926_v0, %v926_v0 }
  0x9e   :  { %v79_v7 = vmul.f32 0.03125, %v66_v4  ;;  %v380_v9 = vmul.f32 %v929_v1, %v929_v1  ;;  %698 = vmatpush3.bf16.msra.mxu1 %v710_v57 }
  0x9f   :  { %v938_v10 = vsub.f32 %v844_v16, %v78_v6  ;;  %v391_v12 = vsel %vm48_vm0, %v379_v8, 0.0 }
  0xa0   :  { %v941_v11 = vsub.f32 %v849_v17, %v79_v7  ;;  %108 = vadd.xlane.f32.xlu1 %v107_v5  ;;  %392 = vadd.xlane.f32.xlu0 %v391_v12  ;;  %v351_v13 = vpop.xlane.xlu0 %350  ;;  %v394_v15 = vsel %vm48_vm0, %v380_v9, 0.0 }
  0xa1   :  { %v354_v14 = vpop.xlane.xlu1 %353  ;;  %v365_v18 = vmul.f32 0.03125, %v351_v13  ;;  %v94_v22 = vmul.f32 %v938_v10, %v938_v10 }
  0xa2   :  { %v366_v19 = vmul.f32 0.03125, %v354_v14  ;;  %v95_v16 = vmul.f32 %v941_v11, %v941_v11 }
  0xa3   :  { %v950_v23 = vsub.f32 %v858_v20, %v365_v18  ;;  %v110_v26 = vsel %vm48_vm0, %v94_v22, 0.0 }
  0xa4   :  { %v953_v17 = vsub.f32 %v863_v21, %v366_v19  ;;  %395 = vadd.xlane.f32.xlu1 %v394_v15  ;;  %111 = vadd.xlane.f32.xlu0 %v110_v26  ;;  %v69_v27 = vpop.xlane.xlu0 %68  ;;  %v113_v31 = vsel %vm48_vm0, %v95_v16, 0.0 }
  0xa5   :  { %v72_v30 = vpop.xlane.xlu1 %71  ;;  %v80_v32 = vmul.f32 0.03125, %v69_v27  ;;  %v381_v34 = vmul.f32 %v950_v23, %v950_v23 }
  0xa6   :  { %v81_v33 = vmul.f32 0.03125, %v72_v30  ;;  %v382_v20 = vmul.f32 %v953_v17, %v953_v17 }
  0xa7   :  { %v962_v35 = vsub.f32 %v872_v24, %v80_v32  ;;  %v397_v38 = vsel %vm48_vm0, %v381_v34, 0.0  ;;  %v1002_v34 = vld [vmem:[%s1149_s2] ss:$0 sm:$0xff] }
  0xa8   :  { %v965_v21 = vsub.f32 %v877_v25, %v81_v33  ;;  %114 = vadd.xlane.f32.xlu1 %v113_v31  ;;  %398 = vadd.xlane.f32.xlu0 %v397_v38  ;;  %v357_v39 = vpop.xlane.xlu0 %356  ;;  %v400_v41 = vsel %vm48_vm0, %v382_v20, 0.0 }
  0xa9   :  { %v360_v40 = vpop.xlane.xlu1 %359  ;;  %v367_v42 = vmul.f32 0.03125, %v357_v39  ;;  %v96_v46 = vmul.f32 %v962_v35, %v962_v35 }
  0xaa   :  { %v368_v43 = vmul.f32 0.03125, %v360_v40  ;;  %v97_v24 = vmul.f32 %v965_v21, %v965_v21 }
  0xab   :  { %v974_v47 = vsub.f32 %v886_v28, %v367_v42  ;;  %v116_v48 = vsel %vm48_vm0, %v96_v46, 0.0 }
  0xac   :  { %v977_v25 = vsub.f32 %v891_v29, %v368_v43  ;;  %401 = vadd.xlane.f32.xlu1 %v400_v41  ;;  %117 = vadd.xlane.f32.xlu0 %v116_v48  ;;  %v119_v49 = vsel %vm48_vm0, %v97_v24, 0.0  ;;  %v707_v29 = vld [vmem:[%s1147_s4 + $0x8] sm:$0xff]  }
  0xad   :  { %v383_v50 = vmul.f32 %v974_v47, %v974_v47  ;;  %683 = vmatprep.subr.bf16.mxu0 %v707_v29 }
  0xae   :  { %v384_v51 = vmul.f32 %v977_v25, %v977_v25  ;;  %684 = vmatpush3.bf16.msra.mxu0 %v707_v29 }
  0xaf   :  { %v403_v52 = vsel %vm48_vm0, %v383_v50, 0.0  ;;  %685 = vmatprep.subr.bf16.mxu0 %v708_v53 }
  0xb0   :  { %120 = vadd.xlane.f32.xlu1 %v119_v49  ;;  %404 = vadd.xlane.f32.xlu0 %v403_v52  ;;  %v406_v28 = vsel %vm48_vm0, %v384_v51, 0.0  ;;  %v1009_v49 = vld [vmem:[%s1150_s3] ss:$0 sm:$0xff] }
  0xb2   :  { %686 = vmatpush3.bf16.msra.mxu0 %v708_v53 }
  0xb4   :  { %407 = vadd.xlane.f32.xlu1 %v406_v28 }
 0x11d   :  { %v100_v58 = vpop.xlane.xlu0 %99 }
 0x11e   :  { %v122_v59 = vmul.f32 0.03125, %v100_v58 }
 0x120   :  { %v130_v60 = vadd.f32 1e-05, %v122_v59 }
 0x121   :  { %v103_v61 = vpop.xlane.xlu1 %102  ;;  %v387_v62 = vpop.xlane.xlu0 %386 }
 0x122   :  { %711 = vrsqrt.f32 %v130_v60  ;;  %v123_v63 = vmul.f32 0.03125, %v103_v61  ;;  %v409_v2 = vmul.f32 0.03125, %v387_v62 }
 0x124   :  { %v131_v3 = vadd.f32 1e-05, %v123_v63  ;;  %v417_v4 = vadd.f32 1e-05, %v409_v2 }
 0x125   :  { %v390_v5 = vpop.xlane.xlu1 %389  ;;  %v106_v6 = vpop.xlane.xlu0 %105 }
 0x126   :  { %713 = vrsqrt.f32 %v131_v3  ;;  %v410_v7 = vmul.f32 0.03125, %v390_v5  ;;  %v124_v8 = vmul.f32 0.03125, %v106_v6 }
 0x127   :  { %715 = vrsqrt.f32 %v417_v4 }
 0x128   :  { %v418_v9 = vadd.f32 1e-05, %v410_v7  ;;  %v132_v12 = vadd.f32 1e-05, %v124_v8  ;;  %v1027_v7 = vld [vmem:[%s1152_s7] ss:$0 sm:$0xff] }
 0x129   :  { %v109_v13 = vpop.xlane.xlu1 %108  ;;  %v393_v14 = vpop.xlane.xlu0 %392 }
 0x12a   :  { %717 = vrsqrt.f32 %v418_v9  ;;  %v125_v15 = vmul.f32 0.03125, %v109_v13  ;;  %v411_v18 = vmul.f32 0.03125, %v393_v14 }
 0x12b   :  { %719 = vrsqrt.f32 %v132_v12 }
 0x12c   :  { %v133_v19 = vadd.f32 1e-05, %v125_v15  ;;  %v419_v22 = vadd.f32 1e-05, %v411_v18 }
 0x12d   :  { %v396_v16 = vpop.xlane.xlu1 %395  ;;  %v112_v26 = vpop.xlane.xlu0 %111 }
 0x12e   :  { %721 = vrsqrt.f32 %v133_v19  ;;  %v412_v27 = vmul.f32 0.03125, %v396_v16  ;;  %v126_v30 = vmul.f32 0.03125, %v112_v26 }
 0x12f   :  { %v712_v31 = vpop.eup %711  ;;  %723 = vrsqrt.f32 %v419_v22 }
 0x130   :  { %v420_v32 = vadd.f32 1e-05, %v412_v27  ;;  %v134_v33 = vadd.f32 1e-05, %v126_v30  ;;  %v146_v20 = vmul.f32 %v712_v31, %v897_v36 }
 0x131   :  { %v115_v38 = vpop.xlane.xlu1 %114  ;;  %v399_v39 = vpop.xlane.xlu0 %398 }
 0x132   :  { %725 = vrsqrt.f32 %v420_v32  ;;  %v127_v40 = vmul.f32 0.03125, %v115_v38  ;;  %v413_v41 = vmul.f32 0.03125, %v399_v39  ;;  %v160_v43 = vmul.f32 %v1002_v34, %v146_v20 }
 0x133   :  { %v714_v42 = vpop.eup %713  ;;  %727 = vrsqrt.f32 %v134_v33 }
 0x134   :  { %v716_v46 = vpop.eup %715  ;;  %v135_v24 = vadd.f32 1e-05, %v127_v40  ;;  %v421_v48 = vadd.f32 1e-05, %v413_v41  ;;  %v147_v50 = vmul.f32 %v714_v42, %v905_v44  ;;  %v174_v58 = vadd.f32 %v1009_v49, %v160_v43 }
 0x135   :  { %v402_v36 = vpop.xlane.xlu1 %401  ;;  %v118_v51 = vpop.xlane.xlu0 %117  ;;  %v433_v52 = vmul.f32 %v716_v46, %v899_v37 }
 0x136   :  { %729 = vrsqrt.f32 %v135_v24  ;;  %v414_v28 = vmul.f32 0.03125, %v402_v36  ;;  %v128_v29 = vmul.f32 0.03125, %v118_v51  ;;  %v161_v53 = vmul.f32 %v1002_v34, %v147_v50 }
 0x137   :  { %v718_v57 = vpop.eup %717  ;;  %731 = vrsqrt.f32 %v421_v48  ;;  %v447_v2 = vmul.f32 %v1017_v56, %v433_v52 }
 0x138   :  { %v720_v59 = vpop.eup %719  ;;  %v422_v44 = vadd.f32 1e-05, %v414_v28  ;;  %v136_v60 = vadd.f32 1e-05, %v128_v29  ;;  %v175_v61 = vadd.f32 %v1009_v49, %v161_v53  ;;  %v434_v37 = vmul.f32 %v718_v57, %v907_v45 }
 0x139   :  { %v121_v62 = vpop.xlane.xlu1 %120  ;;  %v405_v63 = vpop.xlane.xlu0 %404  ;;  %v148_v3 = vmul.f32 %v720_v59, %v915_v54  ;;  %v461_v18 = vadd.f32 %v1027_v7, %v447_v2 }
 0x13a   :  { %733 = vrsqrt.f32 %v422_v44  ;;  %v129_v4 = vmul.f32 0.03125, %v121_v62  ;;  %v415_v5 = vmul.f32 0.03125, %v405_v63  ;;  %v182_v6 = vpack.c.bf16 %v175_v61, %v174_v58 }
 0x13b   :  { %v722_v8 = vpop.eup %721  ;;  %735 = vrsqrt.f32 %v136_v60  ;;  %v448_v9 = vmul.f32 %v1017_v56, %v434_v37  ;;  %v162_v45 = vmul.f32 %v1002_v34, %v148_v3 }
 0x13c   :  { %v724_v12 = vpop.eup %723  ;;  %v137_v13 = vadd.f32 1e-05, %v129_v4  ;;  %v423_v14 = vadd.f32 1e-05, %v415_v5  ;;  %687 = vmatprep.mubr.msk.bf16.mxu0 %vm48_vm0, %v182_v6  ;;  %v149_v54 = vmul.f32 %v722_v8, %v917_v55 }
 0x13d   :  { %v408_v15 = vpop.xlane.xlu1 %407  ;;  %v462_v19 = vadd.f32 %v1027_v7, %v448_v9  ;;  %v435_v22 = vmul.f32 %v724_v12, %v926_v0  ;;  %v176_v31 = vadd.f32 %v1009_v49, %v162_v45 }
 0x13e   :  { %737 = vrsqrt.f32 %v137_v13  ;;  %v416_v16 = vmul.f32 0.03125, %v408_v15  ;;  %v163_v26 = vmul.f32 %v1002_v34, %v149_v54 }
 0x13f   :  { %v726_v27 = vpop.eup %725  ;;  %739 = vrsqrt.f32 %v423_v14  ;;  %v469_v30 = vpack.c.bf16 %v462_v19, %v461_v18  ;;  %v449_v38 = vmul.f32 %v1017_v56, %v435_v22 }
 0x140   :  { %v728_v32 = vpop.eup %727  ;;  %v424_v33 = vadd.f32 1e-05, %v416_v16  ;;  %v177_v55 = vadd.f32 %v1009_v49, %v163_v26  ;;  %v436_v20 = vmul.f32 %v726_v27, %v929_v1 }
 0x141   :  { %699 = vmatprep.mubr.msk.bf16.mxu1 %vm48_vm0, %v469_v30  ;;  %v150_v0 = vmul.f32 %v728_v32, %v938_v10  ;;  %v463_v43 = vadd.f32 %v1027_v7, %v449_v38 }
 0x142   :  { %741 = vrsqrt.f32 %v424_v33  ;;  %v183_v39 = vpack.c.bf16 %v177_v55, %v176_v31  ;;  %v450_v40 = vmul.f32 %v1017_v56, %v436_v20 }
 0x143   :  { %v730_v41 = vpop.eup %729  ;;  %v164_v24 = vmul.f32 %v1002_v34, %v150_v0 }
 0x144   :  { %v732_v42 = vpop.eup %731  ;;  %688 = vmatmul.mubr.msk.bf16.vlgmr.msra.gmra.mxu0 %vm48_vm0, %v183_v39  ;;  %v464_v46 = vadd.f32 %v1027_v7, %v450_v40  ;;  %v151_v1 = vmul.f32 %v730_v41, %v941_v11 }
 0x145   :  { %v437_v48 = vmul.f32 %v732_v42, %v950_v23  ;;  %v178_v52 = vadd.f32 %v1009_v49, %v164_v24 }
 0x146   :  { %v470_v50 = vpack.c.bf16 %v464_v46, %v463_v43  ;;  %v165_v10 = vmul.f32 %v1002_v34, %v151_v1 }
 0x147   :  { %v734_v36 = vpop.eup %733  ;;  %v451_v53 = vmul.f32 %v1017_v56, %v437_v48 }
 0x148   :  { %v736_v51 = vpop.eup %735  ;;  %700 = vmatmul.mubr.msk.bf16.vlgmr.msra.gmra.mxu1 %vm48_vm0, %v470_v50  ;;  %v179_v28 = vadd.f32 %v1009_v49, %v165_v10  ;;  %v438_v29 = vmul.f32 %v734_v36, %v953_v17 }
 0x149   :  { %v152_v11 = vmul.f32 %v736_v51, %v962_v35  ;;  %v465_v44 = vadd.f32 %v1027_v7, %v451_v53 }
 0x14a   :  { %v184_v57 = vpack.c.bf16 %v179_v28, %v178_v52  ;;  %v452_v23 = vmul.f32 %v1017_v56, %v438_v29 }
 0x14b   :  { %v738_v58 = vpop.eup %737  ;;  %v166_v37 = vmul.f32 %v1002_v34, %v152_v11 }
 0x14c   :  { %v740_v59 = vpop.eup %739  ;;  %691 = vmatprep.mubr.msk.bf16.mxu0 %vm48_vm0, %v184_v57  ;;  %v466_v60 = vadd.f32 %v1027_v7, %v452_v23  ;;  %v153_v61 = vmul.f32 %v738_v58, %v965_v21 }
 0x14d   :  { %v439_v17 = vmul.f32 %v740_v59, %v974_v47  ;;  %v180_v2 = vadd.f32 %v1009_v49, %v166_v37 }
 0x14e   :  { %v471_v62 = vpack.c.bf16 %v466_v60, %v465_v44  ;;  %v167_v35 = vmul.f32 %v1002_v34, %v153_v61 }
 0x14f   :  { %v742_v63 = vpop.eup %741  ;;  %v453_v5 = vmul.f32 %v1017_v56, %v439_v17 }
 0x150   :  { %703 = vmatprep.mubr.msk.bf16.mxu1 %vm48_vm0, %v471_v62  ;;  %v181_v3 = vadd.f32 %v1009_v49, %v167_v35  ;;  %v440_v4 = vmul.f32 %v742_v63, %v977_v25  ;;  %v623_v49 = vld [vmem:[%s1153_s5] ss:$0 sm:$0xff] }
 0x151   :  { %v467_v47 = vadd.f32 %v1027_v7, %v453_v5 }
 0x152   :  { %v185_v6 = vpack.c.bf16 %v181_v3, %v180_v2  ;;  %v454_v21 = vmul.f32 %v1017_v56, %v440_v4  ;;  %v640_v56 = vld [vmem:[%s1154_s9] ss:$0 sm:$0xff] }
 0x154   :  { %692 = vmatmul.mubr.msk.bf16.gmra.mxu0 %vm48_vm0, %v185_v6  ;;  %v468_v34 = vadd.f32 %v1027_v7, %v454_v21 }
 0x156   :  { %v472_v8 = vpack.c.bf16 %v468_v34, %v467_v47 }
 0x158   :  { %704 = vmatmul.mubr.msk.bf16.gmra.mxu1 %vm48_vm0, %v472_v8 }
 0x204   :  { %v689_v9 = vpop.f32.mrf.mxu0 }
 0x205   :  { %v264_v25 = vadd.f32 %v689_v9, %v623_v49 }
 0x206   :  { %v255_v45 = vpop.f32.mrf.mxu0 }
 0x207   :  { %v657_v12 = vpack.c.bf16 %v264_v25, %v264_v25  ;;  %v256_v13 = vadd.f32 %v623_v49, %v255_v45 }
 0x208   :  { %v690_v14 = vpop.f32.mrf.mxu0  ;;  %v701_v54 = vpop.f32.mrf.mxu1 }
 0x209   :  { %321 = vst.msk [vmem:[%s1155_s10 + $0x8] sm:$0xf] %vm318_vm1, %v657_v12  ;;  %v655_v7 = vpack.c.bf16 %v256_v13, %v256_v13  ;;  %v267_v15 = vadd.f32 %v690_v14, %v623_v49  ;;  %v551_v18 = vadd.f32 %v701_v54, %v640_v56 }
 0x20a   :  { %v258_v19 = vpop.f32.mrf.mxu0  ;;  %v542_v22 = vpop.f32.mrf.mxu1 }
 0x20b   :  { %319 = vst.msk [vmem:[%s1155_s10] sm:$0xf] %vm318_vm1, %v655_v7  ;;  %v658_v16 = vpack.c.bf16 %v267_v15, %v267_v15  ;;  %v665_v26 = vpack.c.bf16 %v551_v18, %v551_v18  ;;  %v259_v27 = vadd.f32 %v623_v49, %v258_v19  ;;  %v543_v30 = vadd.f32 %v640_v56, %v542_v22 }
 0x20c   :  { %v702_v31 = vpop.f32.mrf.mxu1 }
 0x20d   :  { %322 = vst.msk [vmem:[%s1155_s10 + $0xc] sm:$0xf] %vm318_vm1, %v658_v16  ;;  %607 = vst.msk [vmem:[%s1156_s11 + $0x8] sm:$0xf] %vm318_vm1, %v665_v26  ;;  %v656_v32 = vpack.c.bf16 %v259_v27, %v259_v27  ;;  %v663_v33 = vpack.c.bf16 %v543_v30, %v543_v30  ;;  %v554_v55 = vadd.f32 %v702_v31, %v640_v56 }
 0x20e   :  { %v545_v20 = vpop.f32.mrf.mxu1 }
 0x20f   :  { %320 = vst.msk [vmem:[%s1155_s10 + $0x4] sm:$0xf] %vm318_vm1, %v656_v32  ;;  %605 = vst.msk [vmem:[%s1156_s11] sm:$0xf] %vm318_vm1, %v663_v33  ;;  %v666_v38 = vpack.c.bf16 %v554_v55, %v554_v55  ;;  %v546_v0 = vadd.f32 %v640_v56, %v545_v20 }
 0x211   :  { %608 = vst.msk [vmem:[%s1156_s11 + $0xc] sm:$0xf] %vm318_vm1, %v666_v38  ;;  %v664_v39 = vpack.c.bf16 %v546_v0, %v546_v0 }
 0x213   :  { %606 = vst.msk [vmem:[%s1156_s11 + $0x4] sm:$0xf] %vm318_vm1, %v664_v39 }
 0x214   :  { %v693_v40 = vpop.f32.mrf.mxu0 }
 0x215   :  { %v280_v41 = vadd.f32 %v693_v40, %v623_v49 }
 0x216   :  { %v271_v42 = vpop.f32.mrf.mxu0 }
 0x217   :  { %v661_v43 = vpack.c.bf16 %v280_v41, %v280_v41  ;;  %v272_v46 = vadd.f32 %v623_v49, %v271_v42 }
 0x218   :  { %v694_v1 = vpop.f32.mrf.mxu0  ;;  %v705_v24 = vpop.f32.mrf.mxu1 }
 0x219   :  { %325 = vst.msk [vmem:[%s1155_s10 + $0x18] sm:$0xf] %vm318_vm1, %v661_v43  ;;  %v659_v48 = vpack.c.bf16 %v272_v46, %v272_v46  ;;  %v283_v50 = vadd.f32 %v694_v1, %v623_v49  ;;  %v567_v10 = vadd.f32 %v705_v24, %v640_v56 }
 0x21a   :  { %v274_v36 = vpop.f32.mrf.mxu0  ;;  %v558_v51 = vpop.f32.mrf.mxu1 }
 0x21b   :  { %323 = vst.msk [vmem:[%s1155_s10 + $0x10] sm:$0xf] %vm318_vm1, %v659_v48  ;;  %v662_v52 = vpack.c.bf16 %v283_v50, %v283_v50  ;;  %v669_v28 = vpack.c.bf16 %v567_v10, %v567_v10  ;;  %v275_v29 = vadd.f32 %v623_v49, %v274_v36  ;;  %v559_v53 = vadd.f32 %v640_v56, %v558_v51 }
 0x21c   :  { %v706_v11 = vpop.f32.mrf.mxu1 }
 0x21d   :  { %326 = vst.msk [vmem:[%s1155_s10 + $0x1c] sm:$0xf] %vm318_vm1, %v662_v52  ;;  %611 = vst.msk [vmem:[%s1156_s11 + $0x18] sm:$0xf] %vm318_vm1, %v669_v28  ;;  %v660_v57 = vpack.c.bf16 %v275_v29, %v275_v29  ;;  %v667_v23 = vpack.c.bf16 %v559_v53, %v559_v53  ;;  %v570_v58 = vadd.f32 %v706_v11, %v640_v56 }
 0x21e   :  { %v561_v59 = vpop.f32.mrf.mxu1 }
 0x21f   :  { %324 = vst.msk [vmem:[%s1155_s10 + $0x14] sm:$0xf] %vm318_vm1, %v660_v57  ;;  %609 = vst.msk [vmem:[%s1156_s11 + $0x10] sm:$0xf] %vm318_vm1, %v667_v23  ;;  %v670_v44 = vpack.c.bf16 %v570_v58, %v570_v58  ;;  %v562_v60 = vadd.f32 %v640_v56, %v561_v59 }
 0x221   :  { %612 = vst.msk [vmem:[%s1156_s11 + $0x1c] sm:$0xf] %vm318_vm1, %v670_v44  ;;  %v668_v61 = vpack.c.bf16 %v562_v60, %v562_v60 }
 0x223   :  { %610 = vst.msk [vmem:[%s1156_s11 + $0x14] sm:$0xf] %vm318_vm1, %v668_v61 }

</bundles_post_ra>
